<compile_context>
chip_gen: v6e
topology: v6e:2x2x1
jax: 0.10.0
libtpu: 0.0.40
codegen_flags: <defaults>
</compile_context>

<pallas_src>
import functools

import jax
import jax.numpy as jnp
from jax.experimental import pallas as pl
from jax.experimental.pallas import tpu as pltpu


# ------------------------------- kernels -----------------------------------

def _siren_kernel(x_ref, w_ref, b_ref, o_ref, *, apply_sin):
    # x_ref: (1, Cin, tm), w_ref: (Cout, Cin), b_ref: (Cout, 1),
    # o_ref: (1, Cout, tm).  Output is lane-dense along tm.
    x = x_ref[0]                                                     # (Cin, tm)
    y = jnp.dot(w_ref[...], x, preferred_element_type=jnp.float32)  # f32 acc
    y = y + b_ref[...]
    if apply_sin:
        y = jnp.sin(y)          # w0 already folded into weight/bias
    o_ref[0] = y.astype(o_ref.dtype)


def _siren_stack_kernel(*refs, num_layers, apply_sin_last):
    # refs = (x, w_0..w_{L-1}, b_0..b_{L-1}, out)
    # x: (1, C0, tm); w_l: (C_{l+1}, C_l) resident; b_l: (C_{l+1}, 1) resident;
    # out: (1, C_L, tm).  Inter-layer activations stay in VMEM as f32.
    x_ref = refs[0]
    w_refs = refs[1:1 + num_layers]
    b_refs = refs[1 + num_layers:1 + 2 * num_layers]
    o_ref = refs[1 + 2 * num_layers]

    a = x_ref[0]                                                     # (C0, tm)
    for l in range(num_layers):
        y = jnp.dot(w_refs[l][...], a, preferred_element_type=jnp.float32)
        y = y + b_refs[l][...]
        if l < num_layers - 1 or apply_sin_last:
            y = jnp.sin(y)      # w0 already folded into this layer's W/b
        a = y                   # f32 carried to the next layer (never to HBM)
    o_ref[0] = a.astype(o_ref.dtype)


# ---------------------------- budgeting helpers -----------------------------

def _vmem_capacity_bytes():
    """Per-TensorCore VMEM capacity; conservative fallback if query fails."""
    try:
        info = pltpu.get_tpu_info()
        cap = getattr(info, "vmem_capacity_bytes", None)
        if cap:
            return int(cap)
    except Exception:
        pass
    return 64 << 20   # v7x per-TC VMEM — the tightest current generation


def _pick_tile(spatial, n_batch, work_bytes_fn, max_tile_bytes, min_steps=8):
    """Largest lane-dense (multiple-of-128) spatial tile whose per-step working
    set fits `max_tile_bytes`.  Prefers tiles that give >= `min_steps` total
    grid steps (>= ~4 per TensorCore on 2-TC v7x) so the double-buffered
    pipeline has work to overlap; otherwise just takes the largest fit."""
    if spatial <= 128:
        return spatial            # full-extent block satisfies the (8,128) rule
    upper = pl.cdiv(spatial, 128) * 128
    candidates = [t for t in range(128, upper + 1, 128)
                  if work_bytes_fn(t) <= max_tile_bytes]
    if not candidates:
        return 128
    preferred = [t for t in candidates if n_batch * pl.cdiv(spatial, t) >= min_steps]
    return max(preferred) if preferred else max(candidates)


def _vmem_limit(work_bytes, capacity):
    return int(min(max(work_bytes * 3 // 2, 16 << 20), int(capacity * 0.55)))


# ------------------------------- wrappers -----------------------------------

def siren_layer_nchw(x, weight, bias, *, is_last=False):
    """x: (N, Cin, H, W).  weight: (Cout, Cin) (== conv weight[:, :, 0, 0],
    with w0 already folded in unless is_last).  bias: (Cout,) (w0 folded too).
    Returns (N, Cout, H, W), matching PyTorch SirenLayer.forward."""
    n, cin, h, w = x.shape
    cout = weight.shape[0]
    spatial = h * w
    x3 = x.reshape(n, cin, spatial)        # pure reshape, spatial stays lane-dense

    act_isz = jnp.dtype(x.dtype).itemsize
    w_k = weight.astype(x.dtype)           # MXU in the activation dtype
    b_k = bias.astype(jnp.float32).reshape(cout, 1)

    capacity = _vmem_capacity_bytes()
    max_tile_bytes = max(capacity // 5, 2 << 20)

    def work_bytes(t):
        return (2 * (cin + cout) * t * act_isz            # double-buffered io tiles
                + cout * t * 4                            # f32 matmul/sin intermediate
                + cout * cin * w_k.dtype.itemsize + cout * 4)  # resident params

    tm = _pick_tile(spatial, n, work_bytes, max_tile_bytes)
    grid = (n, pl.cdiv(spatial, tm))       # partial last block masked by Pallas

    kernel = functools.partial(_siren_kernel, apply_sin=not is_last)
    y3 = pl.pallas_call(
        kernel,
        out_shape=jax.ShapeDtypeStruct((n, cout, spatial), x.dtype),
        grid_spec=pltpu.PrefetchScalarGridSpec(
            num_scalar_prefetch=0,
            grid=grid,
            in_specs=[
                pl.BlockSpec((1, cin, tm), lambda i, j: (i, 0, j)),
                pl.BlockSpec((cout, cin), lambda i, j: (0, 0)),   # resident
                pl.BlockSpec((cout, 1), lambda i, j: (0, 0)),     # resident
            ],
            out_specs=pl.BlockSpec((1, cout, tm), lambda i, j: (i, 0, j)),
        ),
        compiler_params=pltpu.CompilerParams(
            dimension_semantics=("parallel", "parallel"),
            vmem_limit_bytes=_vmem_limit(work_bytes(tm), capacity),
        ),
    )(x3, w_k, b_k)
    return y3.reshape(n, cout, h, w)


def siren_stack_nchw(x, weights, biases, *, last_is_linear=True):
    """Fused SIREN stack (L SirenLayers) in a single pallas_call.
    weights[l]: (C_{l+1}, C_l) with w0 folded in for every sin layer;
    biases[l]: (C_{l+1},).  Reads each activation tile from HBM once and
    writes the final tile once; all weights stay resident in VMEM."""
    num_layers = len(weights)
    n, cin, h, w = x.shape
    cout = weights[-1].shape[0]
    spatial = h * w
    x3 = x.reshape(n, cin, spatial)

    act_isz = jnp.dtype(x.dtype).itemsize
    w_k = [wl.astype(x.dtype) for wl in weights]
    b_k = [bl.astype(jnp.float32).reshape(-1, 1) for bl in biases]

    max_ch = max([cin] + [wl.shape[0] for wl in w_k])
    param_bytes = (sum(int(wl.size) * wl.dtype.itemsize for wl in w_k)
                   + sum(int(bl.size) * 4 for bl in b_k))

    capacity = _vmem_capacity_bytes()
    max_tile_bytes = max(capacity // 5, 2 << 20)

    def work_bytes(t):
        return (2 * (cin + cout) * t * act_isz   # double-buffered HBM io tiles
                + 2 * max_ch * t * 4             # f32 ping/pong inter-layer acts
                + param_bytes)                   # all layer weights resident

    tm = _pick_tile(spatial, n, work_bytes, max_tile_bytes)
    grid = (n, pl.cdiv(spatial, tm))

    kernel = functools.partial(_siren_stack_kernel, num_layers=num_layers,
                               apply_sin_last=not last_is_linear)

    in_specs = [pl.BlockSpec((1, cin, tm), lambda i, j: (i, 0, j))]
    in_specs += [pl.BlockSpec(wl.shape, lambda i, j: (0, 0)) for wl in w_k]   # resident
    in_specs += [pl.BlockSpec(bl.shape, lambda i, j: (0, 0)) for bl in b_k]   # resident

    y3 = pl.pallas_call(
        kernel,
        out_shape=jax.ShapeDtypeStruct((n, cout, spatial), x.dtype),
        grid_spec=pltpu.PrefetchScalarGridSpec(
            num_scalar_prefetch=0,
            grid=grid,
            in_specs=in_specs,
            out_specs=pl.BlockSpec((1, cout, tm), lambda i, j: (i, 0, j)),
        ),
        compiler_params=pltpu.CompilerParams(
            dimension_semantics=("parallel", "parallel"),
            vmem_limit_bytes=_vmem_limit(work_bytes(tm), capacity),
        ),
    )(x3, *w_k, *b_k)
    return y3.reshape(n, cout, h, w)


# --------------------------- param init / folding ---------------------------

def init_siren_params(key, in_f, out_f, w0=30.0, is_first=False):
    """Mirror SirenLayer.init_weights + PyTorch Conv2d default bias init.
    Returns weight of shape (Cout, Cin) (== conv weight[:, :, 0, 0])."""
    kw, kb = jax.random.split(key)
    b = 1.0 / in_f if is_first else float(jnp.sqrt(6.0 / in_f)) / w0
    weight = jax.random.uniform(kw, (out_f, in_f), jnp.float32, -b, b)
    bb = 1.0 / float(jnp.sqrt(float(in_f)))   # Conv2d bias: U(-1/sqrt(fan_in), .)
    bias = jax.random.uniform(kb, (out_f,), jnp.float32, -bb, bb)
    return weight, bias


def fold_w0_into_params(weight, bias, w0, is_last):
    """One-time constant transform: sin(w0*(Wx+b)) == sin((w0*W)x + (w0*b)).
    No-op for the last layer (no activation there)."""
    if is_last:
        return weight, bias
    return weight * w0, bias * w0


if __name__ == "__main__":
    key = jax.random.PRNGKey(0)
    k_x, k1, k2, k3 = jax.random.split(key, 4)

    N, Cin, H, W = 2, 4, 16, 16
    Chid, Cout = 32, 3
    w0 = 30.0

    x = jax.random.normal(k_x, (N, Cin, H, W), jnp.float32)

    # --- single SirenLayer (the module under test) --------------------------
    w1, b1 = init_siren_params(k1, Cin, Chid, w0=w0, is_first=True)
    w1f, b1f = fold_w0_into_params(w1, b1, w0, is_last=False)
    y1 = jax.block_until_ready(siren_layer_nchw(x, w1f, b1f, is_last=False))

    x3 = x.reshape(N, Cin, H * W)
    ref1 = jnp.sin(w0 * (jnp.einsum("oc,ncs->nos", w1, x3) + b1[None, :, None]))
    ref1 = ref1.reshape(N, Chid, H, W)
    assert y1.shape == (N, Chid, H, W)
    err1 = float(jnp.max(jnp.abs(y1 - ref1)))
    assert err1 < 1e-4, err1

    # --- fused 3-layer SIREN stack (one pallas_call, L x less HBM traffic) --
    w2, b2 = init_siren_params(k2, Chid, Chid, w0=w0, is_first=False)
    w3, b3 = init_siren_params(k3, Chid, Cout, w0=w0, is_first=False)
    w2f, b2f = fold_w0_into_params(w2, b2, w0, is_last=False)
    w3f, b3f = fold_w0_into_params(w3, b3, w0, is_last=True)

    y_stack = siren_stack_nchw(x, [w1f, w2f, w3f], [b1f, b2f, b3f],
                               last_is_linear=True)
    y_stack = jax.block_until_ready(y_stack)

    a = ref1.reshape(N, Chid, H * W)
    a = jnp.sin(w0 * (jnp.einsum("oc,ncs->nos", w2, a) + b2[None, :, None]))
    ref_stack = (jnp.einsum("oc,ncs->nos", w3, a) + b3[None, :, None])
    ref_stack = ref_stack.reshape(N, Cout, H, W)
    assert y_stack.shape == (N, Cout, H, W)
    err2 = float(jnp.max(jnp.abs(y_stack - ref_stack)))
    assert err2 < 1e-3, err2

    print("KERNEL_OK")
</pallas_src>

<mosaic_0001>
module attributes {stable_mosaic.version = 11 : i64} {
  func.func @_siren_kernel(%arg0: i32, %arg1: i32, %arg2: memref<1x4x256xf32, #tpu.memory_space<vmem>>, %arg3: memref<32x4xf32, #tpu.memory_space<vmem>>, %arg4: memref<32x1xf32, #tpu.memory_space<vmem>>, %arg5: memref<1x32x256xf32, #tpu.memory_space<vmem>>) attributes {dimension_semantics = [#tpu.dimension_semantics<parallel>, #tpu.dimension_semantics<parallel>], iteration_bounds = array<i64: 2, 1>, scalar_prefetch = 0 : i64, scratch_operands = 0 : i64, tpu.core_type = #tpu.core_type<tc>, window_params = [{transform_indices = @transform_0, window_bounds = array<i64: 1, 4, 256>}, {pipeline_mode = #tpu.pipeline_mode<synchronous>, transform_indices = @transform_1, window_bounds = array<i64: 32, 4>}, {pipeline_mode = #tpu.pipeline_mode<synchronous>, transform_indices = @transform_2, window_bounds = array<i64: 32, 1>}, {transform_indices = @transform_3, window_bounds = array<i64: 1, 32, 256>}]} {
    %c0 = arith.constant 0 : index
    %c0_0 = arith.constant 0 : index
    %c0_1 = arith.constant 0 : index
    %0 = vector.load %arg2[%c0, %c0_0, %c0_1] : memref<1x4x256xf32, #tpu.memory_space<vmem>>, vector<1x4x256xf32>
    %1 = vector.shape_cast %0 : vector<1x4x256xf32> to vector<4x256xf32>
    %c0_2 = arith.constant 0 : index
    %c0_3 = arith.constant 0 : index
    %2 = vector.load %arg3[%c0_2, %c0_3] : memref<32x4xf32, #tpu.memory_space<vmem>>, vector<32x4xf32>
    %cst = arith.constant dense<0.000000e+00> : vector<32x256xf32>
    %3 = tpu.matmul %2, %1, %cst {dimension_numbers = #tpu.dot_dimension_numbers<[1], [0], [0], [1], [0, 0, 1, 1], [], []>} : vector<32x4xf32>, vector<4x256xf32>, vector<32x256xf32> -> vector<32x256xf32>
    %c0_4 = arith.constant 0 : index
    %c0_5 = arith.constant 0 : index
    %4 = vector.load %arg4[%c0_4, %c0_5] : memref<32x1xf32, #tpu.memory_space<vmem>>, vector<32x1xf32>
    %5 = vector.broadcast %4 : vector<32x1xf32> to vector<32x256xf32>
    %6 = arith.addf %3, %5 : vector<32x256xf32>
    %7 = math.sin %6 : vector<32x256xf32>
    %c0_6 = arith.constant 0 : index
    %c0_7 = arith.constant 0 : index
    %c0_8 = arith.constant 0 : index
    %8 = vector.load %arg5[%c0_6, %c0_7, %c0_8] : memref<1x32x256xf32, #tpu.memory_space<vmem>>, vector<1x32x256xf32>
    %9 = vector.shape_cast %8 : vector<1x32x256xf32> to vector<32x256xf32>
    %10 = vector.shape_cast %7 : vector<32x256xf32> to vector<1x32x256xf32>
    tpu.vector_store %arg5[%c0_6, %c0_7, %c0_8], %10 {strides = array<i32>} : memref<1x32x256xf32, #tpu.memory_space<vmem>>, vector<1x32x256xf32>,
    return
  }
  func.func @transform_0(%arg0: i32, %arg1: i32) -> (i32, i32, i32) {
    %c0_i32 = arith.constant 0 : i32
    %c0_i32_0 = arith.constant 0 : i32
    return %arg0, %c0_i32, %arg1 : i32, i32, i32
  }
  func.func @transform_1(%arg0: i32, %arg1: i32) -> (i32, i32) {
    %c0_i32 = arith.constant 0 : i32
    %c0_i32_0 = arith.constant 0 : i32
    %c0_i32_1 = arith.constant 0 : i32
    return %c0_i32, %c0_i32_0 : i32, i32
  }
  func.func @transform_2(%arg0: i32, %arg1: i32) -> (i32, i32) {
    %c0_i32 = arith.constant 0 : i32
    %c0_i32_0 = arith.constant 0 : i32
    %c0_i32_1 = arith.constant 0 : i32
    return %c0_i32, %c0_i32_0 : i32, i32
  }
  func.func @transform_3(%arg0: i32, %arg1: i32) -> (i32, i32, i32) {
    %c0_i32 = arith.constant 0 : i32
    %c0_i32_0 = arith.constant 0 : i32
    return %arg0, %c0_i32, %arg1 : i32, i32, i32
  }
}

</mosaic_0001>

<bundles_post_ra>
// kernel: tpu_custom_call.1
= control target key start
LH: loop header
LB: loop body
LE: loop exit
PB: predicated region body
PF: predicated region fallthrough
CT: control target
= control target key end

     0   :  { %8 = vsyncpa [#allocation3], 0  ;;  %s2267_s0 = inlined_call_operand.vmem [shape: f32[2,4,256], index: 0, kind: input, shape index: {}]   ;;  %s2268_s1 = inlined_call_operand.vmem [shape: f32[32,4], index: 1, kind: input, shape index: {}]   ;;  %s2269_s2 = inlined_call_operand.vmem [shape: f32[32,1], index: 2, kind: input, shape index: {}]   ;;  %s2270_s3 = inlined_call_operand.hbm [shape: f32[2,32,256], index: 3, kind: output, shape index: {}]  }
   0x1   :  { %10 = vsyncpa [#allocation3 + $0x1], 0  ;;  %s1569_s12 = smov 0   ;;  %s1571_s13 = smov 0  }
   0x2   :  { %s1573_s14 = smov 0   ;;  %s1575_s15 = smov 0  }
   0x3   :  { %s1577_s16 = smov 0   ;;  %s1579_s17 = smov 0  }
   0x4 LB: > { %s1273_s18 = sadd.s32 4294967295, %s1536_s17   ;;  %s1274_s19 = sadd.s32 4294967294, %s1536_s17   ;;  %s1536_s17 = sphi %s1579_s17, %s16_s17   ;;  %s1532_s16 = sphi %s1577_s16, %s2289_s16   ;;  %s1528_s15 = sphi %s1575_s15, %s2288_s15   ;;  %s1524_s14 = sphi %s1573_s14, %s2287_s14   ;;  %s1520_s13 = sphi %s1571_s13, %s2286_s13   ;;  %s1516_s12 = sphi %s1569_s12, %s2285_s12  }
   0x5   : > { %s28_s20 = sadd.s32 1, %s1532_s16  ;;  %s107_s21 = sadd.s32 1, %s1524_s14 }
   0x6   : > { %p30_p0 = scmp.ge.s32.totalorder %s28_s20, 2  ;;  %p117_p1 = scmp.ne.s32.totalorder %s1524_s14, %s1520_s13 }
   0x7   : > { %p118_p2 = scmp.eq.s32.totalorder %s1273_s18, 1  ;;  %p123_p3 = scmp.ne.s32.totalorder %s1520_s13, %s1516_s12 }
   0x8   : > { %s2291_s20 = smov (%p30_p0, %s28_s20), 0  ;;  %p124_p5 = scmp.eq.s32.totalorder %s1274_s19, 1 }
   0x9   : > { %p1609_p4 = por %p118_p2, %p117_p1  ;;  %s102_s23 = ssub.s32 %s1532_s16, %s2291_s20 }
   0xa   : > { %p1277_p6 = scmp.ge.s32.totalorder %s1536_s17, 1  ;;  %p105_p7 = scmp.eq.s32.totalorder %s102_s23, 0 }
   0xb   : > { %p1616_p8 = por %p124_p5, %p123_p3  ;;  %p161_p9 = scmp.lt.s32.totalorder %s1536_s17, 3 }
   0xc   : > { %s1622_s25 = scalar_select %p105_p7, %s1524_s14, %s107_s21  }
   0xd   : > { %p162_p10 = pnand %p1277_p6, %p161_p9 }
   0xe   : > { %p190_p11 = scmp.lt.s32.totalorder (!%p162_p10), %s1528_s15, 1  ;;  %s186_s30 = sand.u32 (!%p162_p10), 1, %s1520_s13  }
   0xf   : > { %165 = sbr.rel (%p162_p10) target bundleno = 476 (0x1dc), region = 32  ;;  %s1325_s6 = sshll.u32 (!%p162_p10), %s1528_s15, 10 }
  0x10   : > { %s2214_s10 = scalar_lea.hbm (!%p162_p10), %s2270_s3, %s1325_s6  ;;  %s1546_s18 = smov (!%p162_p10), [#allocation2]  }
  0x11   : > { %s1464_s19 = sshll.u32 (!%p162_p10), %s1546_s18, 4  ;;  %s1465_s19 = int_to_ptr.vmem [resolvable:$false] %s1464_s19 }
  0x12   : > { %s1466_s21 = scalar_lea.vmem (!%p162_p10), %s1465_s19, 2048 }
  0x14   : > { %v1538_v0 = vmov 0.0   ;;  %v207_v1 = vld [vmem:[%s2269_s2 + $0x10] sm:$0xff]  ;;  %s191_s28 = scalar_select %p190_p11, %s1528_s15, 1  ;;  %v1539_v2 = vmov 0   ;;  %v205_v3 = vld [vmem:[%s2269_s2] sm:$0xff]  ;;  %v208_v4 = vld [vmem:[%s2269_s2 + $0x18] sm:$0xff] }
  0x15   : > { %313 = vmatprep.mubr.f32.mxu0 %v1538_v0  ;;  %325 = vmatprep.mubr.f32.mxu1 %v1538_v0  ;;  %v206_v5 = vld [vmem:[%s2269_s2 + $0x8] sm:$0xff]  ;;  %vm244_vm0 = vcmask 1043456   ;;  %v201_v8 = vld [vmem:[%s2268_s1] sm:$0xff]  ;;  %vm231_vm1 = vcmask 31744   ;;  %v203_v9 = vld [vmem:[%s2268_s1 + $0x10] sm:$0xff]  ;;  %s2222_s15 = scalar_lea.sflag [#allocation3], %s186_s30 }
  0x16   : > { %1426 = vset.pattern.permute.xlu1 %v1539_v2  ;;  %1425 = vset.pattern.permute.xlu0 %v1539_v2  ;;  %s1324_s4 = sshll.u32 %s191_s28, 3  ;;  %v202_v10 = vld [vmem:[%s2268_s1 + $0x8] sm:$0xff]  ;;  %v204_v11 = vld [vmem:[%s2268_s1 + $0x18] sm:$0xff]  ;;  %v1540_v49 = vmov 683565275  }
  0x17   : > { %221 = vperm.xlu1 %1426, %v207_v1   ;;  %211 = vperm.xlu0 %1425, %v205_v3   ;;  %s197_s11 = scalar_lea.vmem %s2267_s0, %s1324_s4  ;;  %v1541_v53 = vmov 2475754826   ;;  %v1542_v55 = vmov 2131351028   ;;  %v1543_v57 = vmov 2102212464  }
  0x18   : > { %v200_v6 = vld [vmem:[%s197_s11] sm:$0xff]  ;;  %v1544_v59 = vmov 920167782   ;;  %v1545_v2 = vmov 1326507024   ;;  %s1278_s4 = sshll.u32 %s186_s30, 6 }
  0x19   : > { %v230_v7 = vcombine.high %v200_v6, %v200_v6  ;;  %s1955_s5 = scalar_lea.vmem [#allocation2], %s1278_s4 }
  0x1a   : > { %s1194_s7 = sshll.u32 %s1955_s5, 4  ;;  %s2216_s7 = int_to_ptr.vmem [resolvable:$true] %s1194_s7 }
  0x1b   : > { %226 = vperm.xlu1 %1426, %v208_v4   ;;  %216 = vperm.xlu0 %1425, %v206_v5   ;;  %s1460_s11 = scalar_lea.vmem %s2216_s7, 1024  ;;  %p1467_p1 = scmp.lt.s32.totalorder %s2216_s7, %s1465_s19 }
  0x1c   : > { %1281 = vmatprep.subr.msk.mxu0 %vm244_vm0, %v230_v7  ;;  %1326 = vmatprep.subr.msk.mxu1 %vm244_vm0, %v230_v7  ;;  %p1461_p12 = scmp.ne.s32.totalorder %s2216_s7, %s1460_s11  ;;  %p1468_p2 = scmp.lt.s32.totalorder %s1466_s21, %s1460_s11 }
  0x1d   : > { %1282 = vmatpush1.msk.msra.mxu0 %vm244_vm0, %v200_v6  ;;  %1327 = vmatpush1.msk.msra.mxu1 %vm244_vm0, %v200_v6 }
  0x1e   : > { %1283 = vmatmul.mubr.msk.f32.vlgmr.msra.gmra.mxu0 %vm231_vm1, %v201_v8  ;;  %1285 = vmatmul.mubr.msk.f32.vlgmr.msra.gmra.mxu1 %vm231_vm1, %v203_v9  ;;  %p1462_p13 = pnand %p1461_p12, %p1609_p4  ;;  %p1469_p3 = por %p1468_p2, %p1467_p1 }
  0x1f   : > { %319 = vmatprep.mubr.f32.mxu0 %v1538_v0  ;;  %331 = vmatprep.mubr.f32.mxu1 %v1538_v0 }
  0x20   : > { %p1463_p0 = pneg %p1462_p13 }
  0x22   : > { %1284 = vmatmul.mubr.msk.f32.gmra.mxu0 %vm231_vm1, %v202_v10  ;;  %1286 = vmatmul.mubr.msk.f32.gmra.mxu1 %vm231_vm1, %v204_v11  ;;  %p1470_p5 = pnand %p1469_p3, %p1463_p0 }
  0x92   : > { %v222_v12 = vpop.permute.xlu1 %221  ;;  %v212_v13 = vpop.permute.xlu0 %211 }
  0xde   : > { %v315_v14 = vpop.f32.mrf.mxu0  ;;  %v327_v15 = vpop.f32.mrf.mxu1 }
  0xdf   : > { %v1653_v16 = vadd.f32 %v315_v14, %v212_v13  ;;  %v1655_v17 = vadd.f32 %v327_v15, %v222_v12 }
  0xe0   : > { %v317_v18 = vpop.f32.mrf.mxu0  ;;  %v329_v37 = vpop.f32.mrf.mxu1 }
  0xe1   : > { %v338_v19 = vand.u32 2147483647, %v1653_v16  ;;  %v341_v20 = vand.u32 2139095040, %v1653_v16  ;;  %v754_v21 = vand.u32 2147483647, %v1655_v17  ;;  %v757_v22 = vand.u32 2139095040, %v1655_v17 }
  0xe2   : > { %v1663_v25 = vadd.f32 %v317_v18, %v212_v13  ;;  %v1669_v43 = vadd.f32 %v329_v37, %v222_v12  ;;  %vm340_vm15 = vcmp.lt.s32.totalorder %v1653_v16, 0 }
  0xe3   : > { %v342_v23 = vshrl.u32 %v341_v20, 23  ;;  %v345_v24 = vand.u32 8388607, %v338_v19  ;;  %v758_v26 = vshrl.u32 %v757_v22, 23  ;;  %v761_v27 = vand.u32 8388607, %v754_v21 }
  0xe4   : > { %v445_v30 = vand.u32 2139095040, %v1663_v25  ;;  %v442_v35 = vand.u32 2147483647, %v1663_v25  ;;  %vm1774_vm0 = vcmp.le.f32.partialorder %v338_v19, 0.7853982 }
  0xe5   : > { %v1287_v28 = vadd.s32 4294967169, %v342_v23  ;;  %v1303_v29 = vadd.s32 4294967169, %v758_v26  ;;  %v346_v31 = vor.u32 8388608, %v345_v24  ;;  %v762_v33 = vor.u32 8388608, %v761_v27 }
  0xe6   : > { %v446_v36 = vshrl.u32 %v445_v30, 23  ;;  %v1679_v47 = vand.u32 8388607, %v442_v35 }
  0xe7   : > { %v348_v32 = vadd.s32 1, %v1287_v28  ;;  %v764_v34 = vadd.s32 1, %v1303_v29  ;;  %v1671_v44 = vshll.u32 %v346_v31, 8  ;;  %v1675_v46 = vshll.u32 %v762_v33, 8 }
  0xe8   : > { %v1291_v39 = vadd.s32 4294967169, %v446_v36 }
  0xe9   : > { %vm349_vm2 = vcmp.gt.s32.totalorder %v348_v32, 0  ;;  %vm765_vm3 = vcmp.gt.s32.totalorder %v764_v34, 0 }
  0xea   : > { %v350_v38 = vsel %vm349_vm2, %v348_v32, 0  ;;  %v766_v42 = vsel %vm765_vm3, %v764_v34, 0  ;;  %v1682_v52 = vadd.s32 1, %v1291_v39 }
  0xeb   : > { %v351_v40 = vshrl.u32 %v350_v38, 5  ;;  %v352_v41 = vand.u32 31, %v350_v38  ;;  %v1673_v45 = vshrl.u32 %v766_v42, 5  ;;  %v768_v51 = vand.u32 31, %v766_v42 }
  0xec   : > { %vm453_vm13 = vcmp.gt.s32.totalorder %v1682_v52, 0 }
  0xed   : > { %v353_v48 = vsub.s32 32, %v352_v41  ;;  %v355_v50 = vshll.u32 %v1540_v49, %v352_v41  ;;  %v358_v54 = vshll.u32 %v1541_v53, %v352_v41  ;;  %v361_v56 = vshll.u32 %v1542_v55, %v352_v41 }
  0xee   : > { %v364_v58 = vshll.u32 %v1543_v57, %v352_v41  ;;  %v367_v60 = vshll.u32 %v1544_v59, %v352_v41  ;;  %vm370_vm4 = vcmp.lt.s32.totalorder %v351_v40, 1  ;;  %vm371_vm5 = vcmp.lt.s32.totalorder %v351_v40, 2 }
  0xef   : > { %v356_v61 = vshrl.u32 %v1541_v53, %v353_v48  ;;  %v359_v62 = vshrl.u32 %v1542_v55, %v353_v48  ;;  %v362_v63 = vshrl.u32 %v1543_v57, %v353_v48  ;;  %v354_v0 = vshrl.u32 %v1540_v49, %v353_v48 }
  0xf0   : > { %v365_v1 = vshrl.u32 %v1544_v59, %v353_v48  ;;  %v368_v3 = vshrl.u32 %v1545_v2, %v353_v48  ;;  %v769_v7 = vsub.s32 32, %v768_v51  ;;  %vm372_vm6 = vcmp.lt.s32.totalorder %v351_v40, 3 }
  0xf1   : > { %v357_v4 = vor.u32 %v356_v61, %v355_v50  ;;  %v360_v5 = vor.u32 %v359_v62, %v358_v54  ;;  %v363_v6 = vor.u32 %v362_v63, %v361_v56  ;;  %vm373_vm7 = vcmp.lt.s32.totalorder %v351_v40, 4 }
  0xf2   : > { %v366_v8 = vor.u32 %v365_v1, %v364_v58  ;;  %v369_v9 = vor.u32 %v368_v3, %v367_v60  ;;  %v771_v20 = vshll.u32 %v1540_v49, %v768_v51  ;;  %v772_v24 = vshrl.u32 %v1541_v53, %v769_v7 }
  0xf3   : > { %v374_v10 = vsel %vm370_vm4, %v354_v0, %v357_v4  ;;  %v375_v11 = vsel %vm373_vm7, %v363_v6, 2102212464  ;;  %v378_v12 = vsel %vm370_vm4, %v357_v4, %v360_v5  ;;  %v382_v13 = vsel %vm370_vm4, %v360_v5, %v363_v6 }
  0xf4   : > { %v376_v14 = vsel %vm372_vm6, %v360_v5, %v375_v11  ;;  %v379_v15 = vsel %vm373_vm7, %v366_v8, 920167782  ;;  %v383_v18 = vsel %vm373_vm7, %v369_v9, 1326507024  ;;  %v774_v26 = vshll.u32 %v1541_v53, %v768_v51 }
  0xf5   : > { %v380_v22 = vsel %vm372_vm6, %v363_v6, %v379_v15  ;;  %v384_v23 = vsel %vm372_vm6, %v366_v8, %v383_v18  ;;  %v377_v27 = vsel %vm371_vm5, %v374_v10, %v376_v14  ;;  %v775_v30 = vshrl.u32 %v1542_v55, %v769_v7 }
  0xf6   : > { %v381_v28 = vsel %vm371_vm5, %v378_v12, %v380_v22  ;;  %v385_v29 = vsel %vm371_vm5, %v382_v13, %v384_v23  ;;  %v773_v36 = vor.u32 %v772_v24, %v771_v20  ;;  %v777_v38 = vshll.u32 %v1542_v55, %v768_v51 }
  0xf7   : > { %v1705_v31 = vmul.u32.u64.low %v1671_v44, %v385_v29  ;;  %v1706_v32 = vmul.u32.u64.high %v1671_v44, %v385_v29, %v1705_v31  ;;  %v1709_v33 = vmul.u32.u64.low %v1671_v44, %v381_v28  ;;  %v1710_v34 = vmul.u32.u64.high %v1671_v44, %v381_v28, %v1709_v33 }
  0xf8   : > { %v776_v37 = vor.u32 %v775_v30, %v774_v26  ;;  %v778_v39 = vshrl.u32 %v1543_v57, %v769_v7  ;;  %v770_v41 = vshrl.u32 %v1540_v49, %v769_v7  ;;  %v780_v40 = vshll.u32 %v1543_v57, %v768_v51 }
  0xf9   : > { %v781_v42 = vshrl.u32 %v1544_v59, %v769_v7  ;;  %v784_v48 = vshrl.u32 %v1545_v2, %v769_v7  ;;  %v393_v50 = vmul.u32 %v1671_v44, %v377_v27  ;;  %v783_v56 = vshll.u32 %v1544_v59, %v768_v51 }
  0xfa   : > { %v779_v54 = vor.u32 %v778_v39, %v777_v38  ;;  %vm786_vm8 = vcmp.lt.s32.totalorder %v1673_v45, 1  ;;  %vm395_vm9 = vc.u32 %v1706_v32, %v1709_v33  ;;  %v396_v58 = vadd.s32 1, %v1710_v34 }
  0xfb   : > { %v782_v60 = vor.u32 %v781_v42, %v780_v40  ;;  %vm787_vm10 = vcmp.lt.s32.totalorder %v1673_v45, 2  ;;  %v785_v61 = vor.u32 %v784_v48, %v783_v56  ;;  %vm788_vm11 = vcmp.lt.s32.totalorder %v1673_v45, 3 }
  0xfc   : > { %vm789_vm12 = vcmp.lt.s32.totalorder %v1673_v45, 4  ;;  %v794_v62 = vsel %vm786_vm8, %v773_v36, %v776_v37  ;;  %v397_v44 = vsel %vm395_vm9, %v396_v58, %v1710_v34  ;;  %v798_v51 = vsel %vm786_vm8, %v776_v37, %v779_v54 }
  0xfd   : > { %v791_v63 = vsel %vm789_vm12, %v779_v54, 2102212464  ;;  %v795_v0 = vsel %vm789_vm12, %v782_v60, 920167782  ;;  %v398_v1 = vadd.s32 %v397_v44, %v393_v50  ;;  %v790_v3 = vsel %vm786_vm8, %v770_v41, %v773_v36 }
  0xfe   : > { %v796_v4 = vsel %vm788_vm11, %v779_v54, %v795_v0  ;;  %v799_v5 = vsel %vm789_vm12, %v785_v61, 1326507024  ;;  %v792_v6 = vsel %vm788_vm11, %v776_v37, %v791_v63  ;;  %v454_v15 = vsel %vm453_vm13, %v1682_v52, 0 }
  0xff   : > { %v797_v7 = vsel %vm787_vm10, %v794_v62, %v796_v4  ;;  %v800_v8 = vsel %vm788_vm11, %v782_v60, %v799_v5  ;;  %v399_v9 = vadd.s32 536870912, %v398_v1  ;;  %v793_v20 = vsel %vm787_vm10, %v790_v3, %v792_v6 }
 0x100   : > { %v801_v10 = vsel %vm787_vm10, %v798_v51, %v800_v8  ;;  %v1733_v11 = vmul.u32.u64.low %v1675_v46, %v797_v7  ;;  %v1734_v12 = vmul.u32.u64.high %v1675_v46, %v797_v7, %v1733_v11  ;;  %v456_v22 = vand.u32 31, %v454_v15 }
 0x101   : > { %v1738_v13 = vmul.u32.u64.low %v1675_v46, %v801_v10  ;;  %v1739_v14 = vmul.u32.u64.high %v1675_v46, %v801_v10, %v1738_v13  ;;  %v400_v18 = vshrl.u32 %v399_v9, 30  ;;  %v861_v23 = vand.u32 2139095040, %v1669_v43 }
 0x102   : > { %v812_v26 = vadd.s32 1, %v1734_v12  ;;  %v450_v27 = vor.u32 8388608, %v1679_v47  ;;  %v809_v28 = vmul.u32 %v1675_v46, %v793_v20  ;;  %v457_v29 = vsub.s32 32, %v456_v22 }
 0x103   : > { %v401_v24 = vshll.u32 %v400_v18, 30  ;;  %vm811_vm14 = vc.u32 %v1739_v14, %v1733_v11  ;;  %v862_v45 = vshrl.u32 %v861_v23, 23  ;;  %v394_v34 = vadd.s32 %v1709_v33, %v1706_v32 }
 0x104   : > { %v813_v52 = vsel %vm811_vm14, %v812_v26, %v1734_v12  ;;  %v1756_v37 = vshll.u32 %v450_v27, 8  ;;  %v858_v46 = vand.u32 2147483647, %v1669_v43  ;;  %v1759_v38 = vshrl.u32 %v454_v15, 5 }
 0x105   : > { %v1750_v30 = vsub.s32 %v398_v1, %v401_v24  ;;  %v814_v31 = vadd.s32 %v813_v52, %v809_v28  ;;  %v460_v39 = vshrl.u32 %v1541_v53, %v457_v29  ;;  %v463_v41 = vshrl.u32 %v1542_v55, %v457_v29 }
 0x106   : > { %v466_v42 = vshrl.u32 %v1543_v57, %v457_v29  ;;  %v469_v48 = vshrl.u32 %v1544_v59, %v457_v29  ;;  %v1766_v32 = vadd.s32 4294967169, %v862_v45  ;;  %v424_v33 = vsub.s32 4, %v400_v18 }
 0x107   : > { %v404_v36 = vsub.s32 0, %v1750_v30  ;;  %v815_v47 = vadd.s32 536870912, %v814_v31  ;;  %v459_v54 = vshll.u32 %v1540_v49, %v456_v22  ;;  %v462_v56 = vshll.u32 %v1541_v53, %v456_v22 }
 0x108   : > { %v465_v61 = vshll.u32 %v1542_v55, %v456_v22  ;;  %v468_v62 = vshll.u32 %v1543_v57, %v456_v22  ;;  %v472_v44 = vshrl.u32 %v1545_v2, %v457_v29  ;;  %v1784_v1 = vand.u32 8388607, %v858_v46 }
 0x109   : > { %v1288_v40 = vmin.u32 %v404_v36, %v1750_v30  ;;  %v1768_v50 = vshrl.u32 %v815_v47, 30  ;;  %v461_v0 = vor.u32 %v460_v39, %v459_v54  ;;  %v464_v51 = vor.u32 %v463_v41, %v462_v56 }
 0x10a   : > { %v467_v19 = vor.u32 %v466_v42, %v465_v61  ;;  %v470_v4 = vor.u32 %v469_v48, %v468_v62  ;;  %v471_v5 = vshll.u32 %v1544_v59, %v456_v22  ;;  %v425_v6 = vsel %vm340_vm15, %v424_v33, %v400_v18 }
 0x10b   : > { %v406_v60 = vclz %v1288_v40  ;;  %v817_v63 = vshll.u32 %v1768_v50, 30  ;;  %v458_v8 = vshrl.u32 %v1540_v49, %v457_v29  ;;  %vm474_vm1 = vcmp.lt.s32.totalorder %v1759_v38, 1 }
 0x10c   : > { %v473_v9 = vor.u32 %v472_v44, %v471_v5  ;;  %vm475_vm3 = vcmp.lt.s32.totalorder %v1759_v38, 2  ;;  %vm476_vm4 = vcmp.lt.s32.totalorder %v1759_v38, 3  ;;  %vm756_vm5 = vcmp.lt.s32.totalorder %v1655_v17, 0 }
 0x10d   : > { %v1289_v3 = vadd.s32 4294967294, %v406_v60  ;;  %v1789_v7 = vsub.s32 %v814_v31, %v817_v63  ;;  %vm477_vm6 = vcmp.lt.s32.totalorder %v1759_v38, 4  ;;  %v482_v13 = vsel %vm474_vm1, %v461_v0, %v464_v51 }
 0x10e   : > { %v479_v20 = vsel %vm477_vm6, %v467_v19, 2102212464  ;;  %v483_v22 = vsel %vm477_vm6, %v470_v4, 920167782  ;;  %v486_v27 = vsel %vm474_vm1, %v464_v51, %v467_v19  ;;  %v487_v45 = vsel %vm477_vm6, %v473_v9, 1326507024 }
 0x10f   : > { %vm1290_vm2 = vcmp.lt.s32.totalorder %v1289_v3, 0  ;;  %v820_v12 = vsub.s32 0, %v1789_v7  ;;  %v484_v26 = vsel %vm476_vm4, %v467_v19, %v483_v22  ;;  %v427_v31 = vsel %vm1774_vm0, 0, %v425_v6 }
 0x110   : > { %v409_v10 = vsel %vm1290_vm2, 0, %v1289_v3  ;;  %v485_v52 = vsel %vm475_vm3, %v482_v13, %v484_v26  ;;  %vm1812_vm7 = vcmp.le.f32.partialorder %v754_v21, 0.7853982  ;;  %v478_v47 = vsel %vm474_vm1, %v458_v8, %v461_v0  ;;  %v321_v13 = vpop.f32.mrf.mxu0 }
 0x111   : > { %v410_v15 = vsub.s32 32, %v409_v10  ;;  %v414_v18 = vsub.s32 4294967266, %v409_v10  ;;  %v411_v23 = vshll.u32 %v1750_v30, %v409_v10  ;;  %v1304_v24 = vmin.u32 %v820_v12, %v1789_v7 }
 0x112   : > { %v840_v40 = vsub.s32 4, %v1768_v50  ;;  %v488_v42 = vsel %vm476_vm4, %v470_v4, %v487_v45  ;;  %v1826_v33 = vmul.u32.u64.low %v1756_v37, %v485_v52  ;;  %v1827_v54 = vmul.u32.u64.high %v1756_v37, %v485_v52, %v1826_v33 }
 0x113   : > { %v412_v28 = vshrl.u32 %v394_v34, %v410_v15  ;;  %v415_v29 = vadd.s32 127, %v414_v18  ;;  %v822_v36 = vclz %v1304_v24  ;;  %v480_v34 = vsel %vm476_vm4, %v464_v51, %v479_v20 }
 0x114   : > { %v489_v21 = vsel %vm475_vm3, %v486_v27, %v488_v42  ;;  %v481_v60 = vsel %vm475_vm3, %v478_v47, %v480_v34  ;;  %v431_v44 = vadd.s32 3, %v427_v31  ;;  %v810_v63 = vadd.s32 %v1733_v11, %v1739_v14 }
 0x115   : > { %v413_v39 = vor.u32 %v412_v28, %v411_v23  ;;  %v416_v41 = vshll.u32 %v415_v29, 23  ;;  %v1305_v48 = vadd.s32 4294967294, %v822_v36  ;;  %v868_v0 = vadd.s32 1, %v1766_v32  ;;  %v1850_v23 = vpop.permute.xlu0 %216 }
 0x116   : > { %v1833_v61 = vmul.u32.u64.low %v1756_v37, %v489_v21  ;;  %v1834_v62 = vmul.u32.u64.high %v1756_v37, %v489_v21, %v1833_v61  ;;  %v841_v4 = vsel %vm756_vm5, %v840_v40, %v1768_v50  ;;  %v497_v6 = vmul.u32 %v1756_v37, %v481_v60 }
 0x117   : > { %v417_v56 = vor.u32 4788187, %v416_v41  ;;  %vm1306_vm8 = vcmp.lt.s32.totalorder %v1305_v48, 0  ;;  %v420_v3 = vcvt.s32.f32 %v413_v39  ;;  %v500_v8 = vadd.s32 1, %v1827_v54 }
 0x118   : > { %v825_v19 = vsel %vm1306_vm8, 0, %v1305_v48  ;;  %vm499_vm9 = vc.u32 %v1834_v62, %v1826_v33  ;;  %vm869_vm10 = vcmp.gt.s32.totalorder %v868_v0, 0  ;;  %v843_v15 = vsel %vm1812_vm7, 0, %v841_v4 }
 0x119   : > { %v418_v51 = vand.u32 2147483647, %v417_v56  ;;  %v826_v38 = vsub.s32 32, %v825_v19  ;;  %v830_v5 = vsub.s32 4294967266, %v825_v19  ;;  %v827_v10 = vshll.u32 %v1789_v7, %v825_v19 }
 0x11a   : > { %v501_v32 = vsel %vm499_vm9, %v500_v8, %v1827_v54  ;;  %v870_v12 = vsel %vm869_vm10, %v868_v0, 0  ;;  %v1855_v27 = vadd.f32 %v321_v13, %v1850_v23  ;;  %v1860_v29 = vand.u32 3, %v431_v44 }
 0x11b   : > { %v421_v9 = vmul.f32 %v420_v3, %v418_v51  ;;  %v828_v11 = vshrl.u32 %v810_v63, %v826_v38  ;;  %v831_v14 = vadd.s32 127, %v830_v5  ;;  %v502_v37 = vadd.s32 %v501_v32, %v497_v6 }
 0x11c   : > { %v872_v18 = vand.u32 31, %v870_v12  ;;  %v1862_v45 = vadd.s32 3, %v843_v15  ;;  %v866_v36 = vor.u32 8388608, %v1784_v1  ;;  %vm444_vm11 = vcmp.lt.s32.totalorder %v1663_v25, 0 }
 0x11d   : > { %v422_v50 = vxor.u32 2147483648, %v421_v9  ;;  %v829_v20 = vor.u32 %v828_v11, %v827_v10  ;;  %v832_v22 = vshll.u32 %v831_v14, 23  ;;  %v503_v24 = vadd.s32 536870912, %v502_v37 }
 0x11e   : > { %v873_v26 = vsub.s32 32, %v872_v18  ;;  %v1868_v40 = vshrl.u32 %v870_v12, 5  ;;  %v875_v42 = vshll.u32 %v1540_v49, %v872_v18  ;;  %v878_v54 = vshll.u32 %v1541_v53, %v872_v18 }
 0x11f   : > { %v423_v7 = vsel %vm340_vm15, %v422_v50, %v421_v9  ;;  %v833_v52 = vor.u32 4788187, %v832_v22  ;;  %v504_v31 = vshrl.u32 %v503_v24, 30  ;;  %v836_v39 = vcvt.s32.f32 %v829_v20 }
 0x120   : > { %v426_v28 = vsel %vm1774_vm0, %v1653_v16, %v423_v7  ;;  %v876_v47 = vshrl.u32 %v1541_v53, %v873_v26  ;;  %v879_v41 = vshrl.u32 %v1542_v55, %v873_v26  ;;  %v882_v48 = vshrl.u32 %v1543_v57, %v873_v26 }
 0x121   : > { %1428 = vcosq.f32 %v426_v28  ;;  %v834_v34 = vand.u32 2147483647, %v833_v52  ;;  %v505_v58 = vshll.u32 %v504_v31, 30  ;;  %v884_v1 = vshll.u32 %v1543_v57, %v872_v18 }
 0x122   : > { %1430 = vsinq.f32 %v426_v28  ;;  %v885_v56 = vshrl.u32 %v1544_v59, %v873_v26  ;;  %v877_v61 = vor.u32 %v876_v47, %v875_v42  ;;  %v881_v44 = vshll.u32 %v1542_v55, %v872_v18 }
 0x123   : > { %v837_v21 = vmul.f32 %v836_v39, %v834_v34  ;;  %v1875_v60 = vsub.s32 %v502_v37, %v505_v58  ;;  %v549_v63 = vand.u32 2139095040, %v1855_v27  ;;  %v880_v51 = vor.u32 %v879_v41, %v878_v54 }
 0x124   : > { %v886_v3 = vor.u32 %v885_v56, %v884_v1  ;;  %v888_v19 = vshrl.u32 %v1545_v2, %v873_v26  ;;  %v498_v4 = vadd.s32 %v1826_v33, %v1834_v62  ;;  %v883_v5 = vor.u32 %v882_v48, %v881_v44 }
 0x125   : > { %v838_v0 = vxor.u32 2147483648, %v837_v21  ;;  %v508_v38 = vsub.s32 0, %v1875_v60  ;;  %v887_v6 = vshll.u32 %v1544_v59, %v872_v18  ;;  %vm437_vm12 = vcmp.eq.s32.totalorder %v1860_v29, 2 }
 0x126   : > { %v528_v9 = vsub.s32 4, %v504_v31  ;;  %vm890_vm13 = vcmp.lt.s32.totalorder %v1868_v40, 1  ;;  %v1888_v10 = vshll.u32 %v866_v36, 8  ;;  %vm434_vm14 = vcmp.eq.s32.totalorder %v1860_v29, 0 }
 0x127   : > { %v839_v8 = vsel %vm756_vm5, %v838_v0, %v837_v21  ;;  %v1292_v62 = vmin.u32 %v508_v38, %v1875_v60  ;;  %v889_v11 = vor.u32 %v888_v19, %v887_v6  ;;  %vm893_vm15 = vcmp.lt.s32.totalorder %v1868_v40, 4 }
 0x128   : > { %v842_v33 = vsel %vm1812_vm7, %v1655_v17, %v839_v8  ;;  %vm433_vm0 = vcmp.lt.s32.totalorder %v1860_v29, 2  ;;  %v874_v14 = vshrl.u32 %v1540_v49, %v873_v26  ;;  %v898_v32 = vsel %vm890_vm13, %v877_v61, %v880_v51 }
 0x129   : > { %1432 = vcosq.f32 %v842_v33  ;;  %v899_v12 = vsel %vm893_vm15, %v886_v3, 920167782  ;;  %vm430_vm1 = vweird.f32 %v1653_v16  ;;  %vm1905_vm2 = vcmp.le.f32.partialorder %v442_v35, 0.7853982  ;;  %v1959_v16 = vpop.permute.xlu1 %226 }
 0x12a   : > { %1434 = vsinq.f32 %v842_v33  ;;  %v510_v13 = vclz %v1292_v62  ;;  %vm892_vm3 = vcmp.lt.s32.totalorder %v1868_v40, 3  ;;  %v895_v50 = vsel %vm893_vm15, %v883_v5, 2102212464 }
 0x12b   : > { %v529_v15 = vsel %vm444_vm11, %v528_v9, %v504_v31  ;;  %vm891_vm4 = vcmp.lt.s32.totalorder %v1868_v40, 2  ;;  %v900_v37 = vsel %vm892_vm3, %v883_v5, %v899_v12  ;;  %v902_v35 = vsel %vm890_vm13, %v880_v51, %v883_v5 }
 0x12c   : > { %v1293_v18 = vadd.s32 4294967294, %v510_v13  ;;  %v894_v20 = vsel %vm890_vm13, %v874_v14, %v877_v61  ;;  %v901_v22 = vsel %vm891_vm4, %v898_v32, %v900_v37  ;;  %v903_v7 = vsel %vm893_vm15, %v889_v11, 1326507024 }
 0x12d   : > { %v896_v26 = vsel %vm892_vm3, %v880_v51, %v895_v50  ;;  %v904_v28 = vsel %vm892_vm3, %v886_v3, %v903_v7  ;;  %v1925_v52 = vmul.u32.u64.low %v1888_v10, %v901_v22  ;;  %v1926_v31 = vmul.u32.u64.high %v1888_v10, %v901_v22, %v1925_v52 }
 0x12e   : > { %v1429_v24 = vpop.eup %1428  ;;  %vm1294_vm5 = vcmp.lt.s32.totalorder %v1293_v18, 0  ;;  %v905_v34 = vsel %vm891_vm4, %v902_v35, %v904_v28  ;;  %v550_v39 = vshrl.u32 %v549_v63, 23  ;;  %v897_v56 = vsel %vm891_vm4, %v894_v20, %v896_v26 }
 0x12f   : > { %v1431_v36 = vpop.eup %1430  ;;  %v438_v47 = vxor.u32 2147483648, %v1429_v24  ;;  %v513_v58 = vsel %vm1294_vm5, 0, %v1293_v18  ;;  %v1934_v42 = vmul.u32.u64.low %v1888_v10, %v905_v34  ;;  %v1935_v48 = vmul.u32.u64.high %v1888_v10, %v905_v34, %v1934_v42 }
 0x130   : > { %v435_v41 = vxor.u32 2147483648, %v1431_v36  ;;  %v514_v54 = vsub.s32 32, %v513_v58  ;;  %v518_v1 = vsub.s32 4294967266, %v513_v58  ;;  %v848_v44 = vand.u32 3, %v1862_v45  ;;  %v333_v45 = vpop.f32.mrf.mxu1 }
 0x131   : > { %v439_v21 = vsel %vm437_vm12, %v438_v47, %v1431_v36  ;;  %v916_v63 = vadd.s32 1, %v1926_v31  ;;  %v1295_v0 = vadd.s32 4294967169, %v550_v39  ;;  %v515_v3 = vshll.u32 %v1875_v60, %v513_v58 }
 0x132   : > { %v436_v61 = vsel %vm434_vm14, %v1429_v24, %v435_v41  ;;  %v516_v19 = vshrl.u32 %v498_v4, %v514_v54  ;;  %v519_v38 = vadd.s32 127, %v518_v1  ;;  %v531_v40 = vsel %vm1905_vm2, 0, %v529_v15 }
 0x133   : > { %v440_v51 = vsel %vm433_vm0, %v436_v61, %v439_v21  ;;  %v913_v6 = vmul.u32 %v1888_v10, %v897_v56  ;;  %vm915_vm6 = vc.u32 %v1935_v48, %v1925_v52  ;;  %v556_v8 = vadd.s32 1, %v1295_v0 }
 0x134   : > { %v441_v5 = vsel %vm430_vm1, nan, %v440_v51  ;;  %v517_v29 = vor.u32 %v516_v19, %v515_v3  ;;  %v520_v60 = vshll.u32 %v519_v38, 23  ;;  %v917_v4 = vsel %vm915_vm6, %v916_v63, %v1926_v31 }
 0x135   : > { %1170 = vst [vmem:[%s1955_s5] sm:$0xff] %v441_v5  ;;  %v918_v9 = vadd.s32 %v917_v4, %v913_v6  ;;  %v546_v33 = vand.u32 2147483647, %v1855_v27  ;;  %vm853_vm7 = vcmp.eq.s32.totalorder %v848_v44, 2  ;;  %vm557_vm8 = vcmp.gt.s32.totalorder %v556_v8, 0 }
 0x136   : > { %v1433_v62 = vpop.eup %1432  ;;  %v521_v10 = vor.u32 4788187, %v520_v60  ;;  %v1963_v11 = vadd.f32 %v333_v45, %v1959_v16  ;;  %v535_v12 = vadd.s32 3, %v531_v40  ;;  %v558_v50 = vsel %vm557_vm8, %v556_v8, 0 }
 0x137   : > { %v1435_v14 = vpop.eup %1434  ;;  %v854_v32 = vxor.u32 2147483648, %v1433_v62  ;;  %v919_v13 = vadd.s32 536870912, %v918_v9  ;;  %v524_v35 = vcvt.s32.f32 %v517_v29  ;;  %v560_v18 = vand.u32 31, %v558_v50 }
 0x138   : > { %v851_v15 = vxor.u32 2147483648, %v1435_v14  ;;  %v522_v37 = vand.u32 2147483647, %v521_v10  ;;  %vm850_vm9 = vcmp.eq.s32.totalorder %v848_v44, 0  ;;  %v553_v7 = vand.u32 8388607, %v546_v33 }
 0x139   : > { %v855_v20 = vsel %vm853_vm7, %v854_v32, %v1435_v14  ;;  %v1965_v22 = vshrl.u32 %v919_v13, 30  ;;  %vm849_vm10 = vcmp.lt.s32.totalorder %v848_v44, 2  ;;  %v561_v28 = vsub.s32 32, %v560_v18 }
 0x13a   : > { %v852_v24 = vsel %vm850_vm9, %v1433_v62, %v851_v15  ;;  %v525_v26 = vmul.f32 %v524_v35, %v522_v37  ;;  %vm846_vm12 = vweird.f32 %v1655_v17  ;;  %v1971_v39 = vand.u32 3, %v535_v12 }
 0x13b   : > { %v856_v31 = vsel %vm849_vm10, %v852_v24, %v855_v20  ;;  %v921_v36 = vshll.u32 %v1965_v22, 30  ;;  %v564_v41 = vshrl.u32 %v1541_v53, %v561_v28  ;;  %v554_v42 = vor.u32 8388608, %v553_v7 }
 0x13c   : > { %v857_v47 = vsel %vm846_vm12, nan, %v856_v31  ;;  %v526_v34 = vxor.u32 2147483648, %v525_v26  ;;  %v567_v21 = vshrl.u32 %v1542_v55, %v561_v28  ;;  %v965_v54 = vand.u32 2139095040, %v1963_v11 }
 0x13d   : > { %1174 = vst [vmem:[%s1955_s5 + $0x20] sm:$0xff] %v857_v47  ;;  %v1975_v58 = vsub.s32 %v918_v9, %v921_v36  ;;  %v559_v1 = vshrl.u32 %v558_v50, 5  ;;  %v563_v56 = vshll.u32 %v1540_v49, %v560_v18  ;;  %v570_v61 = vshrl.u32 %v1543_v57, %v561_v28 }
 0x13e   : > { %v527_v17 = vsel %vm444_vm11, %v526_v34, %v525_v26  ;;  %v566_v0 = vshll.u32 %v1541_v53, %v560_v18  ;;  %v569_v51 = vshll.u32 %v1542_v55, %v560_v18  ;;  %v572_v19 = vshll.u32 %v1543_v57, %v560_v18 }
 0x13f   : > { %v530_v44 = vsel %vm1905_vm2, %v1663_v25, %v527_v17  ;;  %v924_v63 = vsub.s32 0, %v1975_v58  ;;  %v565_v3 = vor.u32 %v564_v41, %v563_v56  ;;  %v573_v38 = vshrl.u32 %v1544_v59, %v561_v28 }
 0x140   : > { %1436 = vcosq.f32 %v530_v44  ;;  %v568_v40 = vor.u32 %v567_v21, %v566_v0  ;;  %v571_v6 = vor.u32 %v570_v61, %v569_v51  ;;  %v575_v30 = vshll.u32 %v1544_v59, %v560_v18 }
 0x141   : > { %1438 = vsinq.f32 %v530_v44  ;;  %v1308_v5 = vmin.u32 %v924_v63, %v1975_v58  ;;  %v574_v45 = vor.u32 %v573_v38, %v572_v19  ;;  %v576_v29 = vshrl.u32 %v1545_v2, %v561_v28 }
 0x142   : > { %v594_v60 = vshll.u32 %v554_v42, 8  ;;  %v562_v8 = vshrl.u32 %v1540_v49, %v561_v28  ;;  %vm578_vm11 = vcmp.lt.s32.totalorder %v559_v1, 1  ;;  %v966_v9 = vshrl.u32 %v965_v54, 23 }
 0x143   : > { %v926_v4 = vclz %v1308_v5  ;;  %v577_v62 = vor.u32 %v576_v29, %v575_v30  ;;  %vm579_vm13 = vcmp.lt.s32.totalorder %v559_v1, 2  ;;  %vm580_vm14 = vcmp.lt.s32.totalorder %v559_v1, 3 }
 0x144   : > { %vm581_vm15 = vcmp.lt.s32.totalorder %v559_v1, 4  ;;  %v586_v32 = vsel %vm578_vm11, %v565_v3, %v568_v40  ;;  %v582_v13 = vsel %vm578_vm11, %v562_v8, %v565_v3  ;;  %v590_v15 = vsel %vm578_vm11, %v568_v40, %v571_v6 }
 0x145   : > { %v1309_v10 = vadd.s32 4294967294, %v926_v4  ;;  %v583_v14 = vsel %vm581_vm15, %v571_v6, 2102212464  ;;  %v587_v12 = vsel %vm581_vm15, %v574_v45, 920167782  ;;  %vm860_vm1 = vcmp.lt.s32.totalorder %v1669_v43, 0 }
 0x146   : > { %v588_v50 = vsel %vm580_vm14, %v571_v6, %v587_v12  ;;  %v591_v37 = vsel %vm581_vm15, %v577_v62, 1326507024  ;;  %v584_v35 = vsel %vm580_vm14, %v568_v40, %v583_v14  ;;  %v914_v31 = vadd.s32 %v1925_v52, %v1935_v48  ;;  %v323_v62 = vpop.f32.mrf.mxu0 }
 0x147   : > { %vm1310_vm0 = vcmp.lt.s32.totalorder %v1309_v10, 0  ;;  %v589_v18 = vsel %vm579_vm13, %v586_v32, %v588_v50  ;;  %v592_v20 = vsel %vm580_vm14, %v574_v45, %v591_v37  ;;  %v962_v42 = vand.u32 2147483647, %v1963_v11 }
 0x148   : > { %v929_v7 = vsel %vm1310_vm0, 0, %v1309_v10  ;;  %v593_v24 = vsel %vm579_vm13, %v590_v15, %v592_v20  ;;  %v1997_v26 = vmul.u32.u64.low %v594_v60, %v589_v18  ;;  %v1998_v28 = vmul.u32.u64.high %v594_v60, %v589_v18, %v1997_v26 }
 0x149   : > { %v930_v36 = vsub.s32 32, %v929_v7  ;;  %v934_v47 = vsub.s32 4294967266, %v929_v7  ;;  %v2004_v34 = vmul.u32.u64.low %v594_v60, %v593_v24  ;;  %v2005_v41 = vmul.u32.u64.high %v594_v60, %v593_v24, %v2004_v34 }
 0x14a   : > { %v1311_v21 = vadd.s32 4294967169, %v966_v9  ;;  %v931_v54 = vshll.u32 %v1975_v58, %v929_v7  ;;  %v585_v61 = vsel %vm579_vm13, %v582_v13, %v584_v35  ;;  %vm537_vm2 = vcmp.lt.s32.totalorder %v1971_v39, 2 }
 0x14b   : > { %v932_v17 = vshrl.u32 %v914_v31, %v930_v36  ;;  %v935_v56 = vadd.s32 127, %v934_v47  ;;  %v944_v44 = vsub.s32 4, %v1965_v22  ;;  %v604_v52 = vadd.s32 1, %v1998_v28 }
 0x14c   : > { %v972_v48 = vadd.s32 1, %v1311_v21  ;;  %vm538_vm3 = vcmp.eq.s32.totalorder %v1971_v39, 0  ;;  %vm541_vm4 = vcmp.eq.s32.totalorder %v1971_v39, 2  ;;  %v601_v19 = vmul.u32 %v594_v60, %v585_v61 }
 0x14d   : > { %v1437_v63 = vpop.eup %1436  ;;  %v933_v0 = vor.u32 %v932_v17, %v931_v54  ;;  %v936_v51 = vshll.u32 %v935_v56, 23  ;;  %vm603_vm5 = vc.u32 %v2005_v41, %v1997_v26  ;;  %v969_v40 = vand.u32 8388607, %v962_v42 }
 0x14e   : > { %v1439_v3 = vpop.eup %1438  ;;  %v542_v58 = vxor.u32 2147483648, %v1437_v63  ;;  %vm973_vm6 = vcmp.gt.s32.totalorder %v972_v48, 0  ;;  %v605_v5 = vsel %vm603_vm5, %v604_v52, %v1998_v28  ;;  %v945_v45 = vsel %vm860_vm1, %v944_v44, %v1965_v22 }
 0x14f   : > { %v539_v1 = vxor.u32 2147483648, %v1439_v3  ;;  %v937_v38 = vor.u32 4788187, %v936_v51  ;;  %v606_v30 = vadd.s32 %v605_v5, %v601_v19  ;;  %v974_v29 = vsel %vm973_vm6, %v972_v48, 0 }
 0x150   : > { %v543_v6 = vsel %vm541_vm4, %v542_v58, %v1439_v3  ;;  %v940_v8 = vcvt.s32.f32 %v933_v0  ;;  %v976_v9 = vand.u32 31, %v974_v29  ;;  %vm534_vm7 = vweird.f32 %v1663_v25 }
 0x151   : > { %v540_v60 = vsel %vm538_vm3, %v1437_v63, %v539_v1  ;;  %v938_v4 = vand.u32 2147483647, %v937_v38  ;;  %vm2030_vm8 = vcmp.le.f32.partialorder %v858_v46, 0.7853982  ;;  %v607_v22 = vadd.s32 536870912, %v606_v30 }
 0x152   : > { %v544_v10 = vsel %vm537_vm2, %v540_v60, %v543_v6  ;;  %v947_v13 = vsel %vm2030_vm8, 0, %v945_v45  ;;  %v977_v50 = vsub.s32 32, %v976_v9  ;;  %v970_v25 = vor.u32 8388608, %v969_v40 }
 0x153   : > { %v545_v32 = vsel %vm534_vm7, nan, %v544_v10  ;;  %v941_v12 = vmul.f32 %v940_v8, %v938_v4  ;;  %v2037_v15 = vshrl.u32 %v607_v22, 30  ;;  %v979_v39 = vshll.u32 %v1540_v49, %v976_v9 }
 0x154   : > { %1171 = vst [vmem:[%s1955_s5 + $0x8] sm:$0xff] %v545_v32  ;;  %v2041_v37 = vadd.f32 %v323_v62, %v1850_v23  ;;  %v980_v35 = vshrl.u32 %v1541_v53, %v977_v50  ;;  %v982_v18 = vshll.u32 %v1541_v53, %v976_v9  ;;  %v983_v20 = vshrl.u32 %v1542_v55, %v977_v50 }
 0x155   : > { %v942_v46 = vxor.u32 2147483648, %v941_v12  ;;  %v609_v7 = vshll.u32 %v2037_v15, 30  ;;  %v985_v24 = vshll.u32 %v1542_v55, %v976_v9  ;;  %v986_v28 = vshrl.u32 %v1543_v57, %v977_v50 }
 0x156   : > { %v989_v31 = vshrl.u32 %v1544_v59, %v977_v50  ;;  %v975_v23 = vshrl.u32 %v974_v29, 5  ;;  %v981_v47 = vor.u32 %v980_v35, %v979_v39  ;;  %v988_v34 = vshll.u32 %v1543_v57, %v976_v9 }
 0x157   : > { %v943_v36 = vsel %vm860_vm1, %v942_v46, %v941_v12  ;;  %v2056_v54 = vsub.s32 %v606_v30, %v609_v7  ;;  %v984_v17 = vor.u32 %v983_v20, %v982_v18  ;;  %v987_v56 = vor.u32 %v986_v28, %v985_v24 }
 0x158   : > { %v946_v21 = vsel %vm2030_vm8, %v1669_v43, %v943_v36  ;;  %v990_v61 = vor.u32 %v989_v31, %v988_v34  ;;  %v991_v44 = vshll.u32 %v1544_v59, %v976_v9  ;;  %v992_v52 = vshrl.u32 %v1545_v2, %v977_v50  ;;  %v335_v34 = vpop.f32.mrf.mxu1 }
 0x159   : > { %1440 = vcosq.f32 %v946_v21  ;;  %v612_v48 = vsub.s32 0, %v2056_v54  ;;  %v951_v63 = vadd.s32 3, %v947_v13  ;;  %vm997_vm9 = vcmp.lt.s32.totalorder %v975_v23, 4 }
 0x15a   : > { %1442 = vsinq.f32 %v946_v21  ;;  %v993_v0 = vor.u32 %v992_v52, %v991_v44  ;;  %v653_v51 = vand.u32 2139095040, %v2041_v37  ;;  %v978_v58 = vshrl.u32 %v1540_v49, %v977_v50 }
 0x15b   : > { %v1296_v3 = vmin.u32 %v612_v48, %v2056_v54  ;;  %vm994_vm10 = vcmp.lt.s32.totalorder %v975_v23, 1  ;;  %v999_v19 = vsel %vm997_vm9, %v987_v56, 2102212464  ;;  %vm995_vm12 = vcmp.lt.s32.totalorder %v975_v23, 2 }
 0x15c   : > { %v1002_v1 = vsel %vm994_vm10, %v981_v47, %v984_v17  ;;  %v1003_v38 = vsel %vm997_vm9, %v990_v61, 920167782  ;;  %v1010_v5 = vshll.u32 %v970_v25, 8  ;;  %vm996_vm11 = vcmp.lt.s32.totalorder %v975_v23, 3 }
 0x15d   : > { %v614_v40 = vclz %v1296_v3  ;;  %v998_v6 = vsel %vm994_vm10, %v978_v58, %v981_v47  ;;  %v1006_v45 = vsel %vm994_vm10, %v984_v17, %v987_v56  ;;  %v1000_v30 = vsel %vm996_vm11, %v984_v17, %v999_v19 }
 0x15e   : > { %v1004_v29 = vsel %vm996_vm11, %v987_v56, %v1003_v38  ;;  %v1007_v60 = vsel %vm997_vm9, %v993_v0, 1326507024  ;;  %v654_v4 = vshrl.u32 %v653_v51, 23  ;;  %v952_v8 = vand.u32 3, %v951_v63 }
 0x15f   : > { %v1297_v9 = vadd.s32 4294967294, %v614_v40  ;;  %v1005_v62 = vsel %vm995_vm12, %v1002_v1, %v1004_v29  ;;  %v1008_v10 = vsel %vm996_vm11, %v990_v61, %v1007_v60  ;;  %v1001_v13 = vsel %vm995_vm12, %v998_v6, %v1000_v30 }
 0x160   : > { %v1009_v14 = vsel %vm995_vm12, %v1006_v45, %v1008_v10  ;;  %v2069_v22 = vmul.u32.u64.low %v1010_v5, %v1005_v62  ;;  %v2070_v32 = vmul.u32.u64.high %v1010_v5, %v1005_v62, %v2069_v22  ;;  %v1299_v12 = vadd.s32 4294967169, %v654_v4 }
 0x161   : > { %vm1298_vm13 = vcmp.lt.s32.totalorder %v1297_v9, 0  ;;  %v2074_v50 = vmul.u32.u64.low %v1010_v5, %v1009_v14  ;;  %v2075_v25 = vmul.u32.u64.high %v1010_v5, %v1009_v14, %v2074_v50  ;;  %v650_v46 = vand.u32 2147483647, %v2041_v37 }
 0x162   : > { %v617_v39 = vsel %vm1298_vm13, 0, %v1297_v9  ;;  %v660_v35 = vadd.s32 1, %v1299_v12  ;;  %vm950_vm14 = vweird.f32 %v1669_v43  ;;  %v602_v18 = vadd.s32 %v1997_v26, %v2005_v41 }
 0x163   : > { %v618_v20 = vsub.s32 32, %v617_v39  ;;  %v622_v7 = vsub.s32 4294967266, %v617_v39  ;;  %vm957_vm15 = vcmp.eq.s32.totalorder %v952_v8, 2  ;;  %v1017_v24 = vmul.u32 %v1010_v5, %v1001_v13 }
 0x164   : > { %v1020_v28 = vadd.s32 1, %v2070_v32  ;;  %vm661_vm0 = vcmp.gt.s32.totalorder %v660_v35, 0  ;;  %v619_v36 = vshll.u32 %v2056_v54, %v617_v39  ;;  %vm1019_vm1 = vc.u32 %v2075_v25, %v2069_v22 }
 0x165   : > { %v620_v23 = vshrl.u32 %v602_v18, %v618_v20  ;;  %v623_v47 = vadd.s32 127, %v622_v7  ;;  %v657_v41 = vand.u32 8388607, %v650_v46  ;;  %v662_v56 = vsel %vm661_vm0, %v660_v35, 0 }
 0x166   : > { %v1441_v31 = vpop.eup %1440  ;;  %v1021_v26 = vsel %vm1019_vm1, %v1020_v28, %v2070_v32  ;;  %vm954_vm2 = vcmp.eq.s32.totalorder %v952_v8, 0  ;;  %vm548_vm3 = vcmp.lt.s32.totalorder %v1855_v27, 0  ;;  %v664_v63 = vand.u32 31, %v662_v56 }
 0x167   : > { %v1443_v21 = vpop.eup %1442  ;;  %v958_v17 = vxor.u32 2147483648, %v1441_v31  ;;  %v621_v44 = vor.u32 %v620_v23, %v619_v36  ;;  %v624_v52 = vshll.u32 %v623_v47, 23  ;;  %v1022_v48 = vadd.s32 %v1021_v26, %v1017_v24 }
 0x168   : > { %v955_v61 = vxor.u32 2147483648, %v1443_v21  ;;  %v2091_v0 = vadd.f32 %v335_v34, %v1959_v16  ;;  %vm953_vm4 = vcmp.lt.s32.totalorder %v952_v8, 2  ;;  %vm2095_vm5 = vcmp.le.f32.partialorder %v546_v33, 0.7853982 }
 0x169   : > { %v959_v54 = vsel %vm957_vm15, %v958_v17, %v1443_v21  ;;  %v625_v58 = vor.u32 4788187, %v624_v52  ;;  %v1023_v19 = vadd.s32 536870912, %v1022_v48  ;;  %v632_v38 = vsub.s32 4, %v2037_v15 }
 0x16a   : > { %v956_v51 = vsel %vm954_vm2, %v1441_v31, %v955_v61  ;;  %v658_v5 = vor.u32 8388608, %v657_v41  ;;  %v665_v40 = vsub.s32 32, %v664_v63  ;;  %v628_v45 = vcvt.s32.f32 %v621_v44 }
 0x16b   : > { %v960_v1 = vsel %vm953_vm4, %v956_v51, %v959_v54  ;;  %v626_v16 = vand.u32 2147483647, %v625_v58  ;;  %v2102_v30 = vshrl.u32 %v1023_v19, 30  ;;  %v1069_v4 = vand.u32 2139095040, %v2091_v0 }
 0x16c   : > { %v961_v6 = vsel %vm950_vm14, nan, %v960_v1  ;;  %v668_v33 = vshrl.u32 %v1541_v53, %v665_v40  ;;  %v671_v29 = vshrl.u32 %v1542_v55, %v665_v40  ;;  %v674_v60 = vshrl.u32 %v1543_v57, %v665_v40 }
 0x16d   : > { %1175 = vst [vmem:[%s1955_s5 + $0x28] sm:$0xff] %v961_v6  ;;  %v629_v8 = vmul.f32 %v628_v45, %v626_v16  ;;  %v1025_v9 = vshll.u32 %v2102_v30, 30  ;;  %v667_v62 = vshll.u32 %v1540_v49, %v664_v63  ;;  %v670_v43 = vshll.u32 %v1541_v53, %v664_v63 }
 0x16e   : > { %v663_v10 = vshrl.u32 %v662_v56, 5  ;;  %v673_v14 = vshll.u32 %v1542_v55, %v664_v63  ;;  %v676_v32 = vshll.u32 %v1543_v57, %v664_v63  ;;  %v677_v12 = vshrl.u32 %v1544_v59, %v665_v40 }
 0x16f   : > { %v630_v13 = vxor.u32 2147483648, %v629_v8  ;;  %v1026_v50 = vsub.s32 %v1022_v48, %v1025_v9  ;;  %v669_v39 = vor.u32 %v668_v33, %v667_v62  ;;  %v672_v35 = vor.u32 %v671_v29, %v670_v43 }
 0x170   : > { %v675_v18 = vor.u32 %v674_v60, %v673_v14  ;;  %v678_v20 = vor.u32 %v677_v12, %v676_v32  ;;  %v679_v7 = vshll.u32 %v1544_v59, %v664_v63  ;;  %v680_v24 = vshrl.u32 %v1545_v2, %v665_v40 }
 0x171   : > { %v631_v28 = vsel %vm548_vm3, %v630_v13, %v629_v8  ;;  %v633_v31 = vsel %vm548_vm3, %v632_v38, %v2037_v15  ;;  %v1028_v36 = vsub.s32 0, %v1026_v50  ;;  %v698_v23 = vshll.u32 %v658_v5, 8 }
 0x172   : > { %v634_v47 = vsel %vm2095_vm5, %v1855_v27, %v631_v28  ;;  %v666_v34 = vshrl.u32 %v1540_v49, %v665_v40  ;;  %v681_v21 = vor.u32 %v680_v24, %v679_v7  ;;  %v1070_v17 = vshrl.u32 %v1069_v4, 23 }
 0x173   : > { %1444 = vcosq.f32 %v634_v47  ;;  %v1312_v26 = vmin.u32 %v1028_v36, %v1026_v50  ;;  %vm682_vm6 = vcmp.lt.s32.totalorder %v663_v10, 1  ;;  %vm685_vm7 = vcmp.lt.s32.totalorder %v663_v10, 4 }
 0x174   : > { %1446 = vsinq.f32 %v634_v47  ;;  %v687_v41 = vsel %vm685_vm7, %v675_v18, 2102212464  ;;  %v690_v56 = vsel %vm682_vm6, %v669_v39, %v672_v35  ;;  %v691_v61 = vsel %vm685_vm7, %v678_v20, 920167782 }
 0x175   : > { %v1030_v44 = vclz %v1312_v26  ;;  %vm683_vm8 = vcmp.lt.s32.totalorder %v663_v10, 2  ;;  %vm684_vm9 = vcmp.lt.s32.totalorder %v663_v10, 3  ;;  %v686_v15 = vsel %vm682_vm6, %v666_v34, %v669_v39 }
 0x176   : > { %v688_v52 = vsel %vm684_vm9, %v672_v35, %v687_v41  ;;  %v692_v48 = vsel %vm684_vm9, %v675_v18, %v691_v61  ;;  %v694_v54 = vsel %vm682_vm6, %v672_v35, %v675_v18  ;;  %v695_v63 = vsel %vm685_vm7, %v681_v21, 1326507024 }
 0x177   : > { %v635_v51 = vsel %vm2095_vm5, 0, %v633_v31  ;;  %v1313_v58 = vadd.s32 4294967294, %v1030_v44  ;;  %v693_v19 = vsel %vm683_vm8, %v690_v56, %v692_v48  ;;  %v696_v1 = vsel %vm684_vm9, %v678_v20, %v695_v63 }
 0x178   : > { %v689_v38 = vsel %vm683_vm8, %v686_v15, %v688_v52  ;;  %v697_v5 = vsel %vm683_vm8, %v694_v54, %v696_v1  ;;  %v2128_v40 = vmul.u32.u64.low %v698_v23, %v693_v19  ;;  %v2129_v6 = vmul.u32.u64.high %v698_v23, %v693_v19, %v2128_v40 }
 0x179   : > { %vm1314_vm10 = vcmp.lt.s32.totalorder %v1313_v58, 0  ;;  %v2132_v16 = vmul.u32.u64.low %v698_v23, %v697_v5  ;;  %v2133_v45 = vmul.u32.u64.high %v698_v23, %v697_v5, %v2132_v16  ;;  %v1315_v33 = vadd.s32 4294967169, %v1070_v17 }
 0x17a   : > { %v639_v29 = vadd.s32 3, %v635_v51  ;;  %v1033_v60 = vsel %vm1314_vm10, 0, %v1313_v58  ;;  %v1018_v3 = vadd.s32 %v2069_v22, %v2075_v25  ;;  %v705_v62 = vmul.u32 %v698_v23, %v689_v38 }
 0x17b   : > { %v1034_v4 = vsub.s32 32, %v1033_v60  ;;  %v1038_v8 = vsub.s32 4294967266, %v1033_v60  ;;  %v1076_v9 = vadd.s32 1, %v1315_v33  ;;  %v708_v43 = vadd.s32 1, %v2129_v6 }
 0x17c   : > { %v1066_v10 = vand.u32 2147483647, %v2091_v0  ;;  %v1035_v14 = vshll.u32 %v1026_v50, %v1033_v60  ;;  %vm707_vm12 = vc.u32 %v2133_v45, %v2128_v40  ;;  %v640_v13 = vand.u32 3, %v639_v29 }
 0x17d   : > { %v1036_v32 = vshrl.u32 %v1018_v3, %v1034_v4  ;;  %v1039_v12 = vadd.s32 127, %v1038_v8  ;;  %v709_v39 = vsel %vm707_vm12, %v708_v43, %v2129_v6  ;;  %vm1077_vm11 = vcmp.gt.s32.totalorder %v1076_v9, 0 }
 0x17e   : > { %v710_v25 = vadd.s32 %v709_v39, %v705_v62  ;;  %v1078_v18 = vsel %vm1077_vm11, %v1076_v9, 0  ;;  %vm638_vm13 = vweird.f32 %v1855_v27  ;;  %vm964_vm14 = vcmp.lt.s32.totalorder %v1963_v11, 0 }
 0x17f   : > { %v1037_v35 = vor.u32 %v1036_v32, %v1035_v14  ;;  %v1040_v22 = vshll.u32 %v1039_v12, 23  ;;  %v1048_v50 = vsub.s32 4, %v2102_v30  ;;  %v1080_v7 = vand.u32 31, %v1078_v18 }
 0x180   : > { %v1445_v20 = vpop.eup %1444  ;;  %vm2147_vm15 = vcmp.le.f32.partialorder %v962_v42, 0.7853982  ;;  %v711_v23 = vadd.s32 536870912, %v710_v25  ;;  %v1073_v47 = vand.u32 8388607, %v1066_v10  ;;  %vm642_vm0 = vcmp.eq.s32.totalorder %v640_v13, 0 }
 0x181   : > { %v1447_v24 = vpop.eup %1446  ;;  %v646_v28 = vxor.u32 2147483648, %v1445_v20  ;;  %v1041_v36 = vor.u32 4788187, %v1040_v22  ;;  %vm645_vm1 = vcmp.eq.s32.totalorder %v640_v13, 2  ;;  %v1081_v21 = vsub.s32 32, %v1080_v7 }
 0x182   : > { %v643_v34 = vxor.u32 2147483648, %v1447_v24  ;;  %v1044_v41 = vcvt.s32.f32 %v1037_v35  ;;  %v2153_v56 = vshrl.u32 %v711_v23, 30  ;;  %vm641_vm2 = vcmp.lt.s32.totalorder %v640_v13, 2 }
 0x183   : > { %v647_v17 = vsel %vm645_vm1, %v646_v28, %v1447_v24  ;;  %v1042_v26 = vand.u32 2147483647, %v1041_v36  ;;  %v1049_v61 = vsel %vm964_vm14, %v1048_v50, %v2102_v30  ;;  %v1084_v44 = vshrl.u32 %v1541_v53, %v1081_v21 }
 0x184   : > { %v644_v42 = vsel %vm642_vm0, %v1445_v20, %v643_v34  ;;  %v713_v48 = vshll.u32 %v2153_v56, 30  ;;  %v1074_v54 = vor.u32 8388608, %v1073_v47  ;;  %v1083_v51 = vshll.u32 %v1540_v49, %v1080_v7 }
 0x185   : > { %v648_v15 = vsel %vm641_vm2, %v644_v42, %v647_v17  ;;  %v1045_v52 = vmul.f32 %v1044_v41, %v1042_v26  ;;  %v1087_v58 = vshrl.u32 %v1542_v55, %v1081_v21  ;;  %v1090_v19 = vshrl.u32 %v1543_v57, %v1081_v21 }
 0x186   : > { %v649_v63 = vsel %vm638_vm13, nan, %v648_v15  ;;  %v714_v38 = vsub.s32 %v710_v25, %v713_v48  ;;  %v1079_v30 = vshrl.u32 %v1078_v18, 5  ;;  %v1086_v5 = vshll.u32 %v1541_v53, %v1080_v7 }
 0x187   : > { %1172 = vst [vmem:[%s1955_s5 + $0x10] sm:$0xff] %v649_v63  ;;  %v1046_v1 = vxor.u32 2147483648, %v1045_v52  ;;  %v1085_v6 = vor.u32 %v1084_v44, %v1083_v51  ;;  %v1089_v16 = vshll.u32 %v1542_v55, %v1080_v7  ;;  %v1092_v33 = vshll.u32 %v1543_v57, %v1080_v7 }
 0x188   : > { %v1093_v27 = vshrl.u32 %v1544_v59, %v1081_v21  ;;  %v716_v60 = vsub.s32 0, %v714_v38  ;;  %v1095_v3 = vshll.u32 %v1544_v59, %v1080_v7  ;;  %v1096_v4 = vshrl.u32 %v1545_v2, %v1081_v21 }
 0x189   : > { %v1047_v29 = vsel %vm964_vm14, %v1046_v1, %v1045_v52  ;;  %v1088_v53 = vor.u32 %v1087_v58, %v1086_v5  ;;  %v1091_v9 = vor.u32 %v1090_v19, %v1089_v16  ;;  %v1051_v43 = vsel %vm2147_vm15, 0, %v1049_v61 }
 0x18a   : > { %v1050_v8 = vsel %vm2147_vm15, %v1963_v11, %v1047_v29  ;;  %v1094_v62 = vor.u32 %v1093_v27, %v1092_v33  ;;  %v1300_v55 = vmin.u32 %v716_v60, %v714_v38  ;;  %v1097_v57 = vor.u32 %v1096_v4, %v1095_v3 }
 0x18b   : > { %1448 = vcosq.f32 %v1050_v8  ;;  %v1082_v14 = vshrl.u32 %v1540_v49, %v1081_v21  ;;  %v1114_v32 = vshll.u32 %v1074_v54, 8  ;;  %vm1098_vm3 = vcmp.lt.s32.totalorder %v1079_v30, 1 }
 0x18c   : > { %1450 = vsinq.f32 %v1050_v8  ;;  %v718_v59 = vclz %v1300_v55  ;;  %vm1100_vm4 = vcmp.lt.s32.totalorder %v1079_v30, 3  ;;  %vm1101_vm5 = vcmp.lt.s32.totalorder %v1079_v30, 4 }
 0x18d   : > { %v1103_v2 = vsel %vm1101_vm5, %v1091_v9, 2102212464  ;;  %v1106_v12 = vsel %vm1098_vm3, %v1085_v6, %v1088_v53  ;;  %v1107_v13 = vsel %vm1101_vm5, %v1094_v62, 920167782  ;;  %v1110_v39 = vsel %vm1098_vm3, %v1088_v53, %v1091_v9 }
 0x18e   : > { %v1301_v35 = vadd.s32 4294967294, %v718_v59  ;;  %vm1099_vm6 = vcmp.lt.s32.totalorder %v1079_v30, 2  ;;  %v1108_v22 = vsel %vm1100_vm4, %v1091_v9, %v1107_v13  ;;  %v1111_v25 = vsel %vm1101_vm5, %v1097_v57, 1326507024 }
 0x18f   : > { %v1102_v18 = vsel %vm1098_vm3, %v1082_v14, %v1085_v6  ;;  %v1104_v20 = vsel %vm1100_vm4, %v1088_v53, %v1103_v2  ;;  %v1109_v50 = vsel %vm1099_vm6, %v1106_v12, %v1108_v22  ;;  %v1112_v7 = vsel %vm1100_vm4, %v1094_v62, %v1111_v25 }
 0x190   : > { %vm1302_vm7 = vcmp.lt.s32.totalorder %v1301_v35, 0  ;;  %v1113_v49 = vsel %vm1099_vm6, %v1110_v39, %v1112_v7  ;;  %v2182_v24 = vmul.u32.u64.low %v1114_v32, %v1109_v50  ;;  %v2183_v28 = vmul.u32.u64.high %v1114_v32, %v1109_v50, %v2182_v24 }
 0x191   : > { %v1055_v31 = vadd.s32 3, %v1051_v43  ;;  %v721_v36 = vsel %vm1302_vm7, 0, %v1301_v35  ;;  %v2185_v23 = vmul.u32.u64.low %v1114_v32, %v1113_v49  ;;  %v2186_v47 = vmul.u32.u64.high %v1114_v32, %v1113_v49, %v2185_v23 }
 0x192   : > { %v706_v34 = vadd.s32 %v2128_v40, %v2133_v45  ;;  %v722_v21 = vsub.s32 32, %v721_v36  ;;  %v726_v17 = vsub.s32 4294967266, %v721_v36  ;;  %v1105_v26 = vsel %vm1099_vm6, %v1102_v18, %v1104_v20 }
 0x193   : > { %v723_v41 = vshll.u32 %v714_v38, %v721_v36  ;;  %v1124_v44 = vadd.s32 1, %v2183_v28  ;;  %v1056_v15 = vand.u32 3, %v1055_v31  ;;  %v1121_v52 = vmul.u32 %v1114_v32, %v1105_v26 }
 0x194   : > { %v724_v42 = vshrl.u32 %v706_v34, %v722_v21  ;;  %v727_v61 = vadd.s32 127, %v726_v17  ;;  %vm1123_vm8 = vc.u32 %v2186_v47, %v2182_v24  ;;  %vm1054_vm11 = vweird.f32 %v1963_v11 }
 0x195   : > { %v1125_v63 = vsel %vm1123_vm8, %v1124_v44, %v2183_v28  ;;  %vm1061_vm9 = vcmp.eq.s32.totalorder %v1056_v15, 2  ;;  %vm1058_vm10 = vcmp.eq.s32.totalorder %v1056_v15, 0  ;;  %vm1057_vm12 = vcmp.lt.s32.totalorder %v1056_v15, 2 }
 0x196   : > { %v725_v48 = vor.u32 %v724_v42, %v723_v41  ;;  %v728_v54 = vshll.u32 %v727_v61, 23  ;;  %v1126_v58 = vadd.s32 %v1125_v63, %v1121_v52  ;;  %vm652_vm13 = vcmp.lt.s32.totalorder %v2041_v37, 0 }
 0x197   : > { %v736_v8 = vsub.s32 4, %v2153_v56  ;;  %vm651_vm14 = vcmp.le.f32.partialorder %v650_v46, 0.7853982  ;;  %v1122_v12 = vadd.s32 %v2182_v24, %v2186_v47  ;;  %vm742_vm3 = vweird.f32 %v2041_v37 }
 0x198   : > { %v1449_v51 = vpop.eup %1448  ;;  %v729_v19 = vor.u32 4788187, %v728_v54  ;;  %v1127_v38 = vadd.s32 536870912, %v1126_v58  ;;  %v732_v6 = vcvt.s32.f32 %v725_v48  ;;  %vm1068_vm4 = vcmp.lt.s32.totalorder %v2091_v0, 0 }
 0x199   : > { %v1451_v40 = vpop.eup %1450  ;;  %v1062_v45 = vxor.u32 2147483648, %v1449_v51  ;;  %v737_v11 = vsel %vm652_vm13, %v736_v8, %v2153_v56  ;;  %vm1067_vm5 = vcmp.le.f32.partialorder %v1066_v10, 0.7853982 }
 0x19a   : > { %v1059_v1 = vxor.u32 2147483648, %v1451_v40  ;;  %v730_v5 = vand.u32 2147483647, %v729_v19  ;;  %v1128_v33 = vshrl.u32 %v1127_v38, 30  ;;  %v739_v14 = vsel %vm651_vm14, 0, %v737_v11 }
 0x19b   : > { %v1063_v30 = vsel %vm1061_vm9, %v1062_v45, %v1451_v40  ;;  %v743_v59 = vadd.s32 3, %v739_v14  ;;  %vm1158_vm9 = vweird.f32 %v2091_v0 }
 0x19c   : > { %v1060_v16 = vsel %vm1058_vm10, %v1449_v51, %v1059_v1  ;;  %v733_v29 = vmul.f32 %v732_v6, %v730_v5  ;;  %v1129_v3 = vshll.u32 %v1128_v33, 30  ;;  %v1152_v26 = vsub.s32 4, %v1128_v33 }
 0x19d   : > { %v1064_v27 = vsel %vm1057_vm12, %v1060_v16, %v1063_v30  ;;  %v744_v46 = vand.u32 3, %v743_v59 }
 0x19e   : > { %v1065_v60 = vsel %vm1054_vm11, nan, %v1064_v27  ;;  %v734_v4 = vxor.u32 2147483648, %v733_v29  ;;  %v1130_v53 = vsub.s32 %v1126_v58, %v1129_v3  ;;  %v1153_v61 = vsel %vm1068_vm4, %v1152_v26, %v1128_v33 }
 0x19f   : > { %1176 = vst [vmem:[%s1955_s5 + $0x30] sm:$0xff] %v1065_v60  ;;  %vm749_vm0 = vcmp.eq.s32.totalorder %v744_v46, 2  ;;  %vm746_vm1 = vcmp.eq.s32.totalorder %v744_v46, 0  ;;  %vm745_vm2 = vcmp.lt.s32.totalorder %v744_v46, 2 }
 0x1a0   : > { %v735_v9 = vsel %vm652_vm13, %v734_v4, %v733_v29  ;;  %v1132_v55 = vsub.s32 0, %v1130_v53 }
 0x1a1   : > { %v738_v62 = vsel %vm651_vm14, %v2041_v37, %v735_v9  ;;  %v1155_v37 = vsel %vm1067_vm5, 0, %v1153_v61 }
 0x1a2   : > { %1452 = vcosq.f32 %v738_v62  ;;  %v1316_v57 = vmin.u32 %v1132_v55, %v1130_v53  ;;  %v1159_v44 = vadd.s32 3, %v1155_v37 }
 0x1a3   : > { %1454 = vsinq.f32 %v738_v62 }
 0x1a4   : > { %v1134_v43 = vclz %v1316_v57  ;;  %v1160_v15 = vand.u32 3, %v1159_v44 }
 0x1a6   : > { %v1317_v32 = vadd.s32 4294967294, %v1134_v43  ;;  %vm1165_vm6 = vcmp.eq.s32.totalorder %v1160_v15, 2  ;;  %vm1162_vm7 = vcmp.eq.s32.totalorder %v1160_v15, 0  ;;  %vm1161_vm8 = vcmp.lt.s32.totalorder %v1160_v15, 2 }
 0x1a8   : > { %vm1318_vm15 = vcmp.lt.s32.totalorder %v1317_v32, 0 }
 0x1a9   : > { %v1137_v2 = vsel %vm1318_vm15, 0, %v1317_v32 }
 0x1aa   : > { %v1138_v13 = vsub.s32 32, %v1137_v2  ;;  %v1142_v39 = vsub.s32 4294967266, %v1137_v2  ;;  %v1139_v35 = vshll.u32 %v1130_v53, %v1137_v2 }
 0x1ac   : > { %v1140_v22 = vshrl.u32 %v1122_v12, %v1138_v13  ;;  %v1143_v25 = vadd.s32 127, %v1142_v39 }
 0x1ae   : > { %v1141_v20 = vor.u32 %v1140_v22, %v1139_v35  ;;  %v1144_v50 = vshll.u32 %v1143_v25, 23 }
 0x1af   : > { %v1453_v18 = vpop.eup %1452 }
 0x1b0   : > { %v1455_v56 = vpop.eup %1454  ;;  %v750_v7 = vxor.u32 2147483648, %v1453_v18  ;;  %v1145_v28 = vor.u32 4788187, %v1144_v50  ;;  %v1148_v23 = vcvt.s32.f32 %v1141_v20 }
 0x1b1   : > { %v747_v49 = vxor.u32 2147483648, %v1455_v56 }
 0x1b2   : > { %v751_v31 = vsel %vm749_vm0, %v750_v7, %v1455_v56  ;;  %v1146_v24 = vand.u32 2147483647, %v1145_v28 }
 0x1b3   : > { %v748_v36 = vsel %vm746_vm1, %v1453_v18, %v747_v49 }
 0x1b4   : > { %v752_v47 = vsel %vm745_vm2, %v748_v36, %v751_v31  ;;  %v1149_v21 = vmul.f32 %v1148_v23, %v1146_v24 }
 0x1b5   : > { %v753_v34 = vsel %vm742_vm3, nan, %v752_v47 }
 0x1b6   : > { %1173 = vst [vmem:[%s1955_s5 + $0x18] sm:$0xff] %v753_v34  ;;  %v1150_v17 = vxor.u32 2147483648, %v1149_v21 }
 0x1b8   : > { %v1151_v41 = vsel %vm1068_vm4, %v1150_v17, %v1149_v21 }
 0x1b9   : > { %v1154_v42 = vsel %vm1067_vm5, %v2091_v0, %v1151_v41 }
 0x1ba   : > { %1456 = vcosq.f32 %v1154_v42 }
 0x1bb   : > { %1458 = vsinq.f32 %v1154_v42 }
 0x1c7   : > { %v1457_v52 = vpop.eup %1456 }
 0x1c8   : > { %v1459_v48 = vpop.eup %1458  ;;  %v1166_v54 = vxor.u32 2147483648, %v1457_v52 }
 0x1c9   : > { %v1163_v63 = vxor.u32 2147483648, %v1459_v48 }
 0x1ca   : > { %v1167_v10 = vsel %vm1165_vm6, %v1166_v54, %v1459_v48 }
 0x1cb   : > { %v1164_v51 = vsel %vm1162_vm7, %v1457_v52, %v1163_v63 }
 0x1cc   : > { %v1168_v58 = vsel %vm1161_vm8, %v1164_v51, %v1167_v10 }
 0x1cd   : > { %v1169_v40 = vsel %vm1158_vm9, nan, %v1168_v58 }
 0x1ce   : > { %1177 = vst [vmem:[%s1955_s5 + $0x38] sm:$0xff] %v1169_v40 }
 0x1cf   : > { %1473 = shalt.err (!%p1470_p5)
}
 0x1d0   : > { %s1474_s23 = scalar_lea.hbm %s2214_s10, 1024  ;;  %s1478_s28 = scalar_lea.hbm %s2270_s3, 2048 }
 0x1d1   : > { %p1475_p6 = scmp.ne.s32.totalorder %s2214_s10, %s1474_s23  ;;  %p1479_p10 = scmp.lt.s32.totalorder %s2214_s10, %s2270_s3 }
 0x1d2   : > { %p1480_p11 = scmp.lt.s32.totalorder %s1478_s28, %s1474_s23 }
 0x1d3   : > { %p1476_p7 = pnand %p1475_p6, %p1609_p4 }
 0x1d4   : > { %p1481_p12 = por %p1480_p11, %p1479_p10 }
 0x1d5   : > { %p1477_p9 = pneg %p1476_p7 }
 0x1d7   : > { %p1482_p13 = pnand %p1481_p12, %p1477_p9 }
 0x1d9   : > { %1485 = shalt.err (!%p1482_p13)
}
 0x1da   : > { %s1547_s4 = smov 256   ;;  %s1548_s5 = smov 16  }
 0x1db   : > { %1360 = dma.vmem_to_hbm [thread:$0]  (%p1609_p4), %s2216_s7, 1024, %s2214_s10, %s2222_s15, %s1547_s4, %s1547_s4, %s1548_s5  }
 0x1dc PF: > { %p1366_p0 = scmp.ge.s32.totalorder %s1536_s17, 2  ;;  %s1209_s6 = sand.u32 1, %s1516_s12  }
 0x1dd   : > { %s1210_s8 = scalar_lea.sflag [#allocation3], %s1209_s6 }
 0x1de   : > { %p1363_p1 = pnand %p1366_p0, %p1616_p8 }
 0x1e0   : > { %p1364_p2 = pneg %p1363_p1 }
 0x1e2   : > { %1511 = dma.done.wait (%p1364_p2), %s1210_s8, 1024  }
 0x1e3   : > { %1513 = vsyncadd (%p1364_p2), %s1210_s8, 4294966272  ;;  %s16_s17 = sadd.s32 1, %s1536_s17   ;;  %s2285_s12 = smov %s1520_s13 }
 0x1e4   : > { %p13_p3 = scmp.ge.s32.totalorder %s16_s17, 4   ;;  %s2286_s13 = smov %s1524_s14 }
 0x1e5   : > { %s2287_s14 = smov %s1622_s25  ;;  %s2288_s15 = smov %s1532_s16 }
 0x1e6   : > { %s2289_s16 = smov %s2291_s20  ;;  %15 = sbr.rel (!%p13_p3) target bundleno = 4 (0x4), region = 67 }
 0x1eb   :  { %1215 = vsyncpa [#allocation3], 1 }
 0x1ec   :  { %1217 = vsyncpa [#allocation3 + $0x1], 1 }

</bundles_post_ra>
